<compile_context>
chip_gen: v7x
topology: tpu7x:2x2x1
jax: 0.10.0
libtpu: 0.0.40
codegen_flags: <defaults>
</compile_context>

<pallas_src>
import functools

import jax
import jax.numpy as jnp
from jax.experimental import pallas as pl
from jax.experimental.pallas import tpu as pltpu

_LANE = 128
_TM_ALIGN = 16            # bf16 packs 2 rows per sublane -> 16-aligned batch tiles
_MIB = 1024 * 1024


def _cdiv(a, b):
    return -(-a // b)


def _round_up(n, m):
    return _cdiv(n, m) * m


def _pad2(a, shape, dtype):
    """Zero-pad 2-D `a` to `shape` and cast (no-op pad if already that shape)."""
    a = a.astype(dtype)
    if tuple(a.shape) == tuple(shape):
        return a
    return jnp.zeros(shape, dtype).at[: a.shape[0], : a.shape[1]].set(a)


def prepare_params(w1, b1, w2, b2):
    """One-time lane-padding/casting of weights; call once, reuse every forward.

    w1: [D_in, H], b1: [H], w2: [H, D_out], b2: [D_out] (pre-transposed vs torch).
    Padding is exact: padded hidden units see zero weights and zero bias, so
    relu(0) = 0 and the padded W2 rows contribute nothing.
    """
    d_in, h = w1.shape
    d_out = w2.shape[1]
    h_p = _round_up(h, _LANE)
    d_out_p = _round_up(d_out, _LANE)
    w1_p = _pad2(w1, (d_in, h_p), jnp.bfloat16)
    b1_p = _pad2(b1.reshape(1, -1), (1, h_p), jnp.float32)
    w2_p = _pad2(w2, (h_p, d_out_p), jnp.bfloat16)
    b2_p = _pad2(b2.reshape(1, -1), (1, d_out_p), jnp.float32)
    return w1_p, b1_p, w2_p, b2_p


def _mlp_kernel(x_ref, w1_ref, b1_ref, w2_ref, b2_ref, o_ref):
    # fc1: h = relu(x @ W1 + b1)   (bf16 MXU operands, fp32 accumulate)
    x = x_ref[...].astype(jnp.bfloat16)
    h = jnp.dot(x, w1_ref[...], preferred_element_type=jnp.float32)
    h = jnp.maximum(h + b1_ref[...], 0.0)
    # fc2: o = relu(h @ W2 + b2)
    o = jnp.dot(h.astype(jnp.bfloat16), w2_ref[...],
                preferred_element_type=jnp.float32)
    o = jnp.maximum(o + b2_ref[...], 0.0)
    o_ref[...] = o.astype(o_ref.dtype)


def _pick_batch_tile(batch, block_m):
    """Balanced, 16-aligned batch tiles; >=2 grid steps once batch is non-trivial."""
    n_tiles = _cdiv(batch, block_m)
    if batch >= 2 * _TM_ALIGN:         # give v7x's second TensorCore work
        n_tiles = max(n_tiles, 2)
    tm = _round_up(_cdiv(batch, n_tiles), _TM_ALIGN)
    n_steps = _cdiv(batch, tm)
    return tm, n_steps


@functools.partial(jax.jit, static_argnames=("out_dim", "block_m"))
def network_forward(x, w1_p, b1_p, w2_p, b2_p, *, out_dim, block_m=1024):
    """x: [B, D_in] fp32; padded params from prepare_params(); returns [B, out_dim]."""
    batch, d_in = x.shape
    h_p = w1_p.shape[1]
    d_out_p = w2_p.shape[1]

    tm, n_steps = _pick_batch_tile(batch, block_m)
    b_p = tm * n_steps
    if b_p != batch:                   # at most 15 padded rows (sliced off below)
        x = jnp.pad(x, ((0, b_p - batch), (0, 0)))

    itemsize = jnp.dtype(x.dtype).itemsize
    x_tile_bytes = tm * d_in * itemsize
    out_tile_bytes = tm * d_out_p * itemsize
    weight_bytes = (w1_p.size + w2_p.size) * 2 + (b1_p.size + b2_p.size) * 4
    big_weights = weight_bytes > 4 * _MIB
    w_bufs = 1 if big_weights else 2
    h_tile_bytes = tm * h_p * 4
    vmem_need = (2 * (x_tile_bytes + out_tile_bytes)
                 + w_bufs * weight_bytes + 4 * h_tile_bytes + (1 << 20))
    vmem_limit = int(min(max(2 * vmem_need, 32 * _MIB), 64 * _MIB))

    def _resident(shape):
        # Constant-block-index operands. Single-buffer only when large, so the
        # footprint also fits v7x's 64 MiB VMEM / v5e's small scoped default; the
        # tiny-weight path never passes pipeline_mode at all.
        if big_weights:
            return pl.BlockSpec(shape, lambda i: (0, 0),
                                pipeline_mode=pl.Buffered(1))
        return pl.BlockSpec(shape, lambda i: (0, 0))

    cost = pl.CostEstimate(
        flops=2 * batch * (d_in * h_p + h_p * d_out_p),
        transcendentals=0,
        bytes_accessed=(b_p * d_in * itemsize + weight_bytes
                        + b_p * d_out_p * itemsize),
    )

    out_p = pl.pallas_call(
        _mlp_kernel,
        out_shape=jax.ShapeDtypeStruct((b_p, d_out_p), x.dtype),
        grid_spec=pltpu.PrefetchScalarGridSpec(
            num_scalar_prefetch=0,
            grid=(n_steps,),
            in_specs=[
                pl.BlockSpec((tm, d_in), lambda i: (i, 0)),  # x: batch-blocked, full K
                _resident((d_in, h_p)),                       # W1 (bf16, resident)
                _resident((1, h_p)),                          # b1 (fp32, resident)
                _resident((h_p, d_out_p)),                    # W2 (bf16, resident)
                _resident((1, d_out_p)),                      # b2 (fp32, resident)
            ],
            out_specs=pl.BlockSpec((tm, d_out_p), lambda i: (i, 0)),
        ),
        compiler_params=pltpu.CompilerParams(
            dimension_semantics=("parallel",),   # independent batch tiles
            vmem_limit_bytes=vmem_limit,
        ),
        cost_estimate=cost,
    )(x, w1_p, b1_p, w2_p, b2_p)

    # Strip batch + lane padding.
    return out_p[:batch, :out_dim]


def _init_params(key, input_dim, hidden_dim, output_dim):
    # Deterministic init mimicking nn.Linear's U(-1/sqrt(fan_in), 1/sqrt(fan_in)).
    k1, k2, k3, k4 = jax.random.split(key, 4)
    bound1 = 1.0 / (input_dim ** 0.5)
    bound2 = 1.0 / (hidden_dim ** 0.5)
    # Stored pre-transposed: [in, out] (PyTorch stores [out, in]).
    w1 = jax.random.uniform(k1, (input_dim, hidden_dim), jnp.float32, -bound1, bound1)
    b1 = jax.random.uniform(k2, (hidden_dim,), jnp.float32, -bound1, bound1)
    w2 = jax.random.uniform(k3, (hidden_dim, output_dim), jnp.float32, -bound2, bound2)
    b2 = jax.random.uniform(k4, (output_dim,), jnp.float32, -bound2, bound2)
    return w1, b1, w2, b2


if __name__ == "__main__":
    input_dim, hidden_dim, output_dim = 32, 64, 16
    batch = 8

    key = jax.random.PRNGKey(0)
    kx, kp = jax.random.split(key)
    x = jax.random.normal(kx, (batch, input_dim), jnp.float32)
    w1, b1, w2, b2 = _init_params(kp, input_dim, hidden_dim, output_dim)

    params = prepare_params(w1, b1, w2, b2)          # one-time pad/cast, cached
    out = network_forward(x, *params, out_dim=output_dim)
    out = jax.block_until_ready(out)
    assert out.shape == (batch, output_dim)
    assert out.dtype == x.dtype

    # Reference mirroring the kernel's bf16-operand / fp32-accumulate contract.
    xb = x.astype(jnp.bfloat16).astype(jnp.float32)
    w1b = w1.astype(jnp.bfloat16).astype(jnp.float32)
    w2b = w2.astype(jnp.bfloat16).astype(jnp.float32)
    h_ref = jnp.maximum(xb @ w1b + b1, 0.0)
    ref = jnp.maximum(
        h_ref.astype(jnp.bfloat16).astype(jnp.float32) @ w2b + b2, 0.0)
    assert jnp.allclose(out, ref, atol=2e-2, rtol=2e-2)

    # Looser sanity check vs pure-fp32 module math (bf16 rounding of MXU operands).
    ref_f32 = jnp.maximum(jnp.maximum(x @ w1 + b1, 0.0) @ w2 + b2, 0.0)
    assert jnp.allclose(out, ref_f32, atol=5e-2, rtol=5e-2)

    print("KERNEL_OK")
</pallas_src>

<mosaic_0001>
module attributes {stable_mosaic.version = 11 : i64} {
  func.func @_mlp_kernel(%arg0: i32, %arg1: memref<16x32xf32, #tpu.memory_space<vmem>>, %arg2: memref<32x128xbf16, #tpu.memory_space<vmem>>, %arg3: memref<1x128xf32, #tpu.memory_space<vmem>>, %arg4: memref<128x128xbf16, #tpu.memory_space<vmem>>, %arg5: memref<1x128xf32, #tpu.memory_space<vmem>>, %arg6: memref<16x128xf32, #tpu.memory_space<vmem>>) attributes {dimension_semantics = [#tpu.dimension_semantics<parallel>], iteration_bounds = array<i64: 1>, scalar_prefetch = 0 : i64, scratch_operands = 0 : i64, tpu.core_type = #tpu.core_type<tc>, window_params = [{transform_indices = @transform_0, window_bounds = array<i64: 16, 32>}, {pipeline_mode = #tpu.pipeline_mode<synchronous>, transform_indices = @transform_1, window_bounds = array<i64: 32, 128>}, {pipeline_mode = #tpu.pipeline_mode<synchronous>, transform_indices = @transform_2, window_bounds = array<i64: 1, 128>}, {pipeline_mode = #tpu.pipeline_mode<synchronous>, transform_indices = @transform_3, window_bounds = array<i64: 128, 128>}, {pipeline_mode = #tpu.pipeline_mode<synchronous>, transform_indices = @transform_4, window_bounds = array<i64: 1, 128>}, {transform_indices = @transform_5, window_bounds = array<i64: 16, 128>}]} {
    %c0 = arith.constant 0 : index
    %c0_0 = arith.constant 0 : index
    %0 = vector.load %arg1[%c0, %c0_0] : memref<16x32xf32, #tpu.memory_space<vmem>>, vector<16x32xf32>
    %1 = arith.truncf %0 : vector<16x32xf32> to vector<16x32xbf16>
    %c0_1 = arith.constant 0 : index
    %c0_2 = arith.constant 0 : index
    %2 = vector.load %arg2[%c0_1, %c0_2] : memref<32x128xbf16, #tpu.memory_space<vmem>>, vector<32x128xbf16>
    %cst = arith.constant dense<0.000000e+00> : vector<16x128xf32>
    %3 = tpu.matmul %1, %2, %cst {dimension_numbers = #tpu.dot_dimension_numbers<[1], [0], [0], [1], [0, 0, 1, 1], [], []>} : vector<16x32xbf16>, vector<32x128xbf16>, vector<16x128xf32> -> vector<16x128xf32>
    %c0_3 = arith.constant 0 : index
    %c0_4 = arith.constant 0 : index
    %4 = vector.load %arg3[%c0_3, %c0_4] : memref<1x128xf32, #tpu.memory_space<vmem>>, vector<1x128xf32>
    %5 = vector.broadcast %4 : vector<1x128xf32> to vector<16x128xf32>
    %6 = arith.addf %3, %5 : vector<16x128xf32>
    %cst_5 = arith.constant 0.000000e+00 : f32
    %7 = vector.broadcast %cst_5 : f32 to vector<16x128xf32>
    %8 = arith.maximumf %6, %7 : vector<16x128xf32>
    %9 = arith.truncf %8 : vector<16x128xf32> to vector<16x128xbf16>
    %c0_6 = arith.constant 0 : index
    %c0_7 = arith.constant 0 : index
    %10 = vector.load %arg4[%c0_6, %c0_7] : memref<128x128xbf16, #tpu.memory_space<vmem>>, vector<128x128xbf16>
    %cst_8 = arith.constant dense<0.000000e+00> : vector<16x128xf32>
    %11 = tpu.matmul %9, %10, %cst_8 {dimension_numbers = #tpu.dot_dimension_numbers<[1], [0], [0], [1], [0, 0, 1, 1], [], []>} : vector<16x128xbf16>, vector<128x128xbf16>, vector<16x128xf32> -> vector<16x128xf32>
    %c0_9 = arith.constant 0 : index
    %c0_10 = arith.constant 0 : index
    %12 = vector.load %arg5[%c0_9, %c0_10] : memref<1x128xf32, #tpu.memory_space<vmem>>, vector<1x128xf32>
    %13 = vector.broadcast %12 : vector<1x128xf32> to vector<16x128xf32>
    %14 = arith.addf %11, %13 : vector<16x128xf32>
    %cst_11 = arith.constant 0.000000e+00 : f32
    %15 = vector.broadcast %cst_11 : f32 to vector<16x128xf32>
    %16 = arith.maximumf %14, %15 : vector<16x128xf32>
    %c0_12 = arith.constant 0 : index
    %c0_13 = arith.constant 0 : index
    %17 = vector.load %arg6[%c0_12, %c0_13] : memref<16x128xf32, #tpu.memory_space<vmem>>, vector<16x128xf32>
    tpu.vector_store %arg6[%c0_12, %c0_13], %16 {strides = array<i32>} : memref<16x128xf32, #tpu.memory_space<vmem>>, vector<16x128xf32>,
    return
  }
  func.func @transform_0(%arg0: i32) -> (i32, i32) {
    %c0_i32 = arith.constant 0 : i32
    %c0_i32_0 = arith.constant 0 : i32
    return %arg0, %c0_i32 : i32, i32
  }
  func.func @transform_1(%arg0: i32) -> (i32, i32) {
    %c0_i32 = arith.constant 0 : i32
    %c0_i32_0 = arith.constant 0 : i32
    %c0_i32_1 = arith.constant 0 : i32
    return %c0_i32, %c0_i32_0 : i32, i32
  }
  func.func @transform_2(%arg0: i32) -> (i32, i32) {
    %c0_i32 = arith.constant 0 : i32
    %c0_i32_0 = arith.constant 0 : i32
    %c0_i32_1 = arith.constant 0 : i32
    return %c0_i32, %c0_i32_0 : i32, i32
  }
  func.func @transform_3(%arg0: i32) -> (i32, i32) {
    %c0_i32 = arith.constant 0 : i32
    %c0_i32_0 = arith.constant 0 : i32
    %c0_i32_1 = arith.constant 0 : i32
    return %c0_i32, %c0_i32_0 : i32, i32
  }
  func.func @transform_4(%arg0: i32) -> (i32, i32) {
    %c0_i32 = arith.constant 0 : i32
    %c0_i32_0 = arith.constant 0 : i32
    %c0_i32_1 = arith.constant 0 : i32
    return %c0_i32, %c0_i32_0 : i32, i32
  }
  func.func @transform_5(%arg0: i32) -> (i32, i32) {
    %c0_i32 = arith.constant 0 : i32
    %c0_i32_0 = arith.constant 0 : i32
    return %arg0, %c0_i32 : i32, i32
  }
}

</mosaic_0001>

<bundles_post_ra>
// kernel: network_forward.1
= control target key start
LH: loop header
LB: loop body
LE: loop exit
PB: predicated region body
PF: predicated region fallthrough
CT: control target
= control target key end

     0   :  { %10 = vsyncpa [#allocation3], 0  ;;  %s322_s18 = smov [#allocation2]   ;;  %s393_s0 = inlined_call_operand.vmem [shape: f32[16,32], index: 0, kind: input, shape index: {}]   ;;  %s394_s1 = inlined_call_operand.vmem [shape: bf16[32,128], index: 1, kind: input, shape index: {}]   ;;  %s395_s2 = inlined_call_operand.vmem [shape: f32[1,128], index: 2, kind: input, shape index: {}]   ;;  %s396_s3 = inlined_call_operand.hbm [shape: bf16[128,128], index: 3, kind: input, shape index: {}]   ;;  %s397_s4 = inlined_call_operand.vmem [shape: f32[1,128], index: 4, kind: input, shape index: {}]   ;;  %s398_s5 = inlined_call_operand.vmem [shape: f32[16,128], index: 5, kind: output, shape index: {}]  }
   0x1   :  { %s22_s19 = sshll.u32 %s322_s18, 4  ;;  %s298_s22 = scalar_lea.hbm %s396_s3, 1024  ;;  %s23_s19 = int_to_ptr.vmem [resolvable:$true] %s22_s19 }
   0x2   :  { %p299_p0 = scmp.ne.s32.totalorder %s396_s3, %s298_s22  ;;  %p302_p1 = scmp.lt.u32.totalorder %s298_s22, %s396_s3 }
   0x4   :  { %p304_p2 = pnand %p302_p1, %p299_p0 }
   0x6   :  { %307 = shalt.err (!%p304_p2)
}
   0x7   :  { %s308_s27 = scalar_lea.vmem %s23_s19, 1024  ;;  %p313_p4 = scmp.lt.s32.totalorder %s23_s19, %s23_s19 }
   0x8   :  { %p309_p3 = scmp.ne.s32.totalorder %s23_s19, %s308_s27  ;;  %p314_p5 = scmp.lt.s32.totalorder %s308_s27, %s308_s27 }
   0xa   :  { %p315_p6 = por %p314_p5, %p313_p4 }
   0xc   :  { %p316_p7 = pnand %p315_p6, %p309_p3 }
   0xe   :  { %319 = shalt.err (!%p316_p7)
}
   0xf   :  { %s323_s28 = smov 64   ;;  %s324_s29 = smov 4  }
  0x10   :  { %28 = dma.hbm_to_vmem [thread:$0]  %s396_s3, 1024, %s23_s19, [#allocation3], %s323_s28, %s323_s28, %s324_s29  }
  0x11   :  { %320 = dma.done.wait [#allocation3], 1024  }
  0x12   :  { %321 = vsyncadd [#allocation3], 4294966272  ;;  %v325_v0 = vmov 0.0   ;;  %vm326_vm0 = vmmov 0   ;;  %v288_v1 = vld [vmem:[%s394_s1] sm:$0xff]   ;;  %v289_v2 = vld [vmem:[%s394_s1 + $0x8] sm:$0xff]  }
  0x13   :  { %255 = vmatprep.subr.bf16.mxu0 %v325_v0  ;;  %259 = vmatprep.mubr.msk.bf16.mxu0 %vm326_vm0, %v325_v0  ;;  %v35_v3 = vld [vmem:[%s393_s0] sm:$0xff]  ;;  %v36_v4 = vld [vmem:[%s393_s0 + $0x8] sm:$0xff]  ;;  %v290_v5 = vld [vmem:[#allocation2] sm:$0xff]   ;;  %vm61_vm1 = vcmask 261120  }
  0x14   :  { %263 = vmatprep.subr.bf16.mxu1 %v325_v0  ;;  %279 = vmatprep.mubr.msk.bf16.mxu1 %vm326_vm0, %v325_v0  ;;  %v37_v6 = vpack.c.bf16 %v36_v4, %v35_v3  ;;  %v291_v7 = vld [vmem:[#allocation2 + $0x8] sm:$0xff]   ;;  %v292_v8 = vld [vmem:[#allocation2 + $0x10] sm:$0xff]   ;;  %v293_v9 = vld [vmem:[#allocation2 + $0x18] sm:$0xff]  }
  0x15   :  { %256 = vmatpush3.bf16.msra.mxu0 %v288_v1  ;;  %264 = vmatpush3.bf16.msra.mxu1 %v290_v5  ;;  %v294_v10 = vld [vmem:[#allocation2 + $0x20] sm:$0xff]   ;;  %v295_v11 = vld [vmem:[#allocation2 + $0x28] sm:$0xff]   ;;  %v296_v12 = vld [vmem:[#allocation2 + $0x30] sm:$0xff]  }
  0x16   :  { %257 = vmatprep.subr.bf16.mxu0 %v325_v0  ;;  %265 = vmatprep.subr.bf16.mxu1 %v325_v0  ;;  %v297_v13 = vld [vmem:[#allocation2 + $0x38] sm:$0xff]   ;;  %v230_v14 = vld [vmem:[%s395_s2] ss:$0 sm:$0xff] }
  0x17   :  { %v234_v24 = vld [vmem:[%s397_s4] ss:$0 sm:$0xff] }
  0x19   :  { %258 = vmatpush3.bf16.msra.mxu0 %v289_v2  ;;  %266 = vmatpush3.bf16.msra.mxu1 %v291_v7 }
  0x1a   :  { %267 = vmatprep.subr.bf16.mxu1 %v325_v0 }
  0x1c   :  { %260 = vmatmul.mubr.msk.bf16.vlgmr.msra.gmra.mrb[0].mxu0 %vm61_vm1, %v37_v6 }
  0x1d   :  { %268 = vmatpush3.bf16.msra.mxu1 %v292_v8 }
  0x1e   :  { %269 = vmatprep.subr.bf16.mxu1 %v325_v0 }
  0x21   :  { %270 = vmatpush3.bf16.msra.mxu1 %v293_v9 }
  0x22   :  { %271 = vmatprep.subr.bf16.mxu1 %v325_v0 }
  0x25   :  { %272 = vmatpush3.bf16.msra.mxu1 %v294_v10 }
  0x26   :  { %273 = vmatprep.subr.bf16.mxu1 %v325_v0 }
  0x29   :  { %274 = vmatpush3.bf16.msra.mxu1 %v295_v11 }
  0x2a   :  { %275 = vmatprep.subr.bf16.mxu1 %v325_v0 }
  0x2d   :  { %276 = vmatpush3.bf16.msra.mxu1 %v296_v12 }
  0x2e   :  { %277 = vmatprep.subr.bf16.mxu1 %v325_v0 }
  0x31   :  { %278 = vmatpush3.bf16.msra.mxu1 %v297_v13 }
  0xef   :  { %v99_v15 = vpop.f32.mrb[0].mxu0 }
  0xf0   :  { %v100_v16 = vadd.f32 %v230_v14, %v99_v15  ;;  %v261_v17 = vpop.f32.mrb[1].mxu0 }
  0xf1   :  { %v102_v18 = vpop.f32.mrb[2].mxu0 }
  0xf2   :  { %v103_v19 = vadd.f32 %v230_v14, %v102_v18  ;;  %v262_v20 = vpop.f32.mrb[3].mxu0  ;;  %v106_v21 = vmax.f32 %v100_v16, 0.0 }
  0xf4   :  { %v107_v22 = vmax.f32 %v103_v19, 0.0 }
  0xf6   :  { %v108_v23 = vpack.c.bf16 %v107_v22, %v106_v21 }
  0xf8   :  { %280 = vmatmul.mubr.bf16.vlgmr.msra.gmra.mrb[0].mxu1 %v108_v23 }
 0x1cb   :  { %v214_v25 = vpop.f32.mrb[0].mxu1 }
 0x1cc   :  { %v215_v26 = vadd.f32 %v234_v24, %v214_v25  ;;  %v281_v27 = vpop.f32.mrb[1].mxu1 }
 0x1cd   :  { %v217_v28 = vpop.f32.mrb[2].mxu1 }
 0x1ce   :  { %v221_v29 = vmax.f32 %v215_v26, 0.0  ;;  %v218_v30 = vadd.f32 %v234_v24, %v217_v28  ;;  %v282_v31 = vpop.f32.mrb[3].mxu1 }
 0x1d0   :  { %223 = vst [vmem:[%s398_s5] sm:$0xff] %v221_v29  ;;  %v222_v32 = vmax.f32 %v218_v30, 0.0 }
 0x1d2   :  { %224 = vst [vmem:[%s398_s5 + $0x8] sm:$0xff] %v222_v32 }
 0x1d3   :  { %229 = vsyncpa [#allocation3], 1 }

</bundles_post_ra>
